<compile_context>
chip_gen: v6e
topology: v6e:2x2x1
jax: 0.10.0
libtpu: 0.0.40
codegen_flags: <defaults>
</compile_context>

<pallas_src>
import jax
import jax.numpy as jnp
from jax.experimental import pallas as pl
from jax.experimental.pallas import tpu as pltpu


MID = 64                     # mid_layer_out_features in the PyTorch module


def _make_kernel(n_in_cols):
    """n_in_cols = pack * 2 : velocity / goal columns per packed kernel row."""

    def kernel(vel_ref, goal_ref, w1v_ref, w1g_ref, b1_ref, w2_ref, b2_ref,
               out_ref):
        vel = vel_ref[...]        # (tm, pack*2)
        goal = goal_ref[...]      # (tm, pack*2)
        w1v = w1v_ref[...]        # (pack*2, pack*64) block-diag (W1[:2]-W1[2:])
        w1g = w1g_ref[...]        # (pack*2, pack*64) block-diag  W1[2:]

        # ----- Layer 1 on the VPU: unrolled broadcast-FMAs, b1 folded in. ---
        acc = vel[:, 0:1] * w1v[0:1, :] + b1_ref[...]
        for k in range(1, n_in_cols):
            acc = acc + vel[:, k:k + 1] * w1v[k:k + 1, :]
        for k in range(n_in_cols):
            acc = acc + goal[:, k:k + 1] * w1g[k:k + 1, :]
        h1 = jnp.maximum(acc, 0.0)                             # (tm, pack*64)

        # ----- Layer 2 on the MXU: one lane-dense pack*64-wide tile. --------
        h2 = jnp.dot(h1, w2_ref[...], preferred_element_type=jnp.float32)
        h2 = jnp.maximum(h2 + b2_ref[...], 0.0)                # (tm, pack*64)

        out_ref[...] = h2.astype(out_ref.dtype)

    return kernel


def _block_diag(w, pack):
    """(k, n) -> (pack*k, pack*n) block-diagonal with `w` on the diagonal."""
    if pack == 1:
        return w
    z = jnp.zeros_like(w)
    rows = []
    for p in range(pack):
        rows.append(jnp.concatenate([w if q == p else z for q in range(pack)],
                                    axis=1))
    return jnp.concatenate(rows, axis=0)


def _pick_tile(Mp, row_tile):
    """Packed-row tile: multiple of 8 (or == Mp), preferably dividing Mp.

    Returns (tm, Mp_pad).  Mp_pad == Mp whenever a clean tile exists, which
    avoids both the input jnp.pad copy and the post-kernel prefix-slice copy.
    """
    row_tile = max(8, (row_tile // 8) * 8)
    if Mp <= row_tile:
        # Small problem: split into 2 clean tiles when possible so both v7x
        # TensorCores get a grid step; otherwise one full-extent block.
        if Mp >= 16 and Mp % 16 == 0:
            return Mp // 2, Mp
        return Mp, Mp
    # Large problem: largest multiple-of-8 tile <= row_tile dividing Mp.
    lo = max(8, (row_tile // 4) // 8 * 8)
    tm = row_tile
    while tm >= lo:
        if Mp % tm == 0:
            return tm, Mp
        tm -= 8
    # No acceptable divisor: pad up to a multiple of row_tile (sliced after).
    tm = row_tile
    return tm, -(-Mp // tm) * tm


def inputspace_forward(velocity, goal, w1, b1, w2, b2, *,
                       row_tile=4096, pack=2, out_dtype=jnp.float32):
    """velocity, goal: (B, T, 2) float32.  Returns (B, T*MID) in out_dtype.

    pack=2 keeps a 128-wide lane-dense pipeline (safe everywhere);
    pack=4 builds 256-wide tiles to fill the v6e/v7x MXU (tune per chip).
    out_dtype=jnp.bfloat16 halves the dominant output HBM traffic but changes
    numerics vs the f32 reference.
    """
    B, T, D = velocity.shape
    assert D == 2 and w1.shape == (4, MID) and w2.shape == (MID, MID)
    M = B * T
    n_in = pack * 2            # velocity / goal columns per packed kernel row
    n_out = pack * MID         # lanes per packed kernel row

    # --- Fold `delta = goal - velocity` into the weights: -------------------
    #   cat(vel, goal - vel) @ W1 == vel @ (W1[:2] - W1[2:]) + goal @ W1[2:]
    w1v_bd = _block_diag(w1[:2] - w1[2:], pack)        # (n_in, n_out)
    w1g_bd = _block_diag(w1[2:], pack)                 # (n_in, n_out)
    w2_bd = _block_diag(w2, pack)                      # (n_out, n_out)
    b1_bd = jnp.tile(b1.reshape(1, MID), (1, pack))    # (1, n_out)
    b2_bd = jnp.tile(b2.reshape(1, MID), (1, pack))    # (1, n_out)

    # --- Pack `pack` original rows per kernel row (free row-major reshapes,
    #     no wrapper concat; jnp.pad only when no clean tiling exists). ------
    vel2 = velocity.reshape(M, D)
    goal2 = goal.reshape(M, D)
    Mp = -(-M // pack)
    tm, Mp_pad = _pick_tile(Mp, row_tile)
    M_pad = Mp_pad * pack
    if M_pad != M:
        vel2 = jnp.pad(vel2, ((0, M_pad - M), (0, 0)))
        goal2 = jnp.pad(goal2, ((0, M_pad - M), (0, 0)))
    vel_p = vel2.reshape(Mp_pad, n_in)
    goal_p = goal2.reshape(Mp_pad, n_in)

    grid = (Mp_pad // tm,)
    resident = lambda shape: pl.BlockSpec(shape, lambda i: (0, 0))

    # --- VMEM budget: the (tm, n_in) activation blocks lane-pad to 128 lanes
    #     in VMEM (16x inflation); size the scoped limit for double-buffered
    #     vel + goal + out blocks plus weights / headroom.
    lane_pad = max(n_in, 128)
    block_bytes = tm * (2 * lane_pad + n_out) * 4
    vmem_limit = int(min(max(2 * block_bytes + (8 << 20), 32 << 20), 64 << 20))

    out = pl.pallas_call(
        _make_kernel(n_in),
        out_shape=jax.ShapeDtypeStruct((Mp_pad, n_out), out_dtype),
        grid=grid,
        in_specs=[
            pl.BlockSpec((tm, n_in), lambda i: (i, 0)),      # velocity packed
            pl.BlockSpec((tm, n_in), lambda i: (i, 0)),      # goal packed
            resident((n_in, n_out)),                         # W1 (vel part)
            resident((n_in, n_out)),                         # W1 (goal part)
            resident((1, n_out)),                            # b1 (tiled)
            resident((n_out, n_out)),                        # W2 block-diag
            resident((1, n_out)),                            # b2 (tiled)
        ],
        out_specs=pl.BlockSpec((tm, n_out), lambda i: (i, 0)),
        compiler_params=pltpu.CompilerParams(
            dimension_semantics=("parallel",),
            vmem_limit_bytes=vmem_limit),
    )(vel_p, goal_p, w1v_bd, w1g_bd, b1_bd, w2_bd, b2_bd)

    # (Mp_pad, pack*64) row-major is bit-identical to (M_pad, 64).
    out = out.reshape(M_pad, MID)
    if M_pad != M:                    # only when padding was unavoidable
        out = out[:M]
    return out.reshape(B, T * MID)    # == torch.flatten(x, start_dim=1)


def _reference(velocity, goal, w1, b1, w2, b2):
    B, T, _ = velocity.shape
    x = jnp.concatenate([velocity, goal - velocity], axis=-1)
    x = jax.nn.relu(x @ w1 + b1)
    x = jax.nn.relu(x @ w2 + b2)
    return x.reshape(B, T * MID)


if __name__ == "__main__":
    key = jax.random.PRNGKey(0)
    _, k_w1, k_b1, k_w2, k_b2 = jax.random.split(key, 5)

    # Deterministic synthetic parameters (stand-in for initialize_output_weights).
    w1 = jax.random.normal(k_w1, (4, MID), dtype=jnp.float32) * 0.1
    b1 = jax.random.normal(k_b1, (MID,), dtype=jnp.float32) * 0.01
    w2 = jax.random.normal(k_w2, (MID, MID), dtype=jnp.float32) * 0.1
    b2 = jax.random.normal(k_b2, (MID,), dtype=jnp.float32) * 0.01

    ok = True
    # (B, T, row_tile, pack): small case; odd-M padded case; multi-tile grid;
    # pack=4 (256-wide MXU tile) case; two-step default-tile case.
    cases = [(2, 8, 4096, 2), (5, 7, 4096, 2), (4, 8, 8, 2),
             (4, 16, 1024, 4), (16, 256, 4096, 2)]
    for (B, T, rt, pk) in cases:
        kv, kg = jax.random.split(jax.random.fold_in(key, B * 1000 + T), 2)
        velocity = jax.random.normal(kv, (B, T, 2), dtype=jnp.float32)
        goal = jax.random.normal(kg, (B, T, 2), dtype=jnp.float32)

        out = inputspace_forward(velocity, goal, w1, b1, w2, b2,
                                 row_tile=rt, pack=pk)
        out = jax.block_until_ready(out)
        ref = _reference(velocity, goal, w1, b1, w2, b2)

        ok &= out.shape == (B, T * MID)
        ok &= bool(jnp.allclose(out, ref, atol=1e-5, rtol=1e-5))

    assert ok
    print("KERNEL_OK")
</pallas_src>

<mosaic_0001>
module attributes {stable_mosaic.version = 11 : i64} {
  func.func @kernel(%arg0: i32, %arg1: memref<8x4xf32, #tpu.memory_space<vmem>>, %arg2: memref<8x4xf32, #tpu.memory_space<vmem>>, %arg3: memref<4x128xf32, #tpu.memory_space<vmem>>, %arg4: memref<4x128xf32, #tpu.memory_space<vmem>>, %arg5: memref<1x128xf32, #tpu.memory_space<vmem>>, %arg6: memref<128x128xf32, #tpu.memory_space<vmem>>, %arg7: memref<1x128xf32, #tpu.memory_space<vmem>>, %arg8: memref<8x128xf32, #tpu.memory_space<vmem>>) attributes {dimension_semantics = [#tpu.dimension_semantics<parallel>], iteration_bounds = array<i64: 1>, scalar_prefetch = 0 : i64, scratch_operands = 0 : i64, tpu.core_type = #tpu.core_type<tc>, window_params = [{transform_indices = @transform_0, window_bounds = array<i64: 8, 4>}, {transform_indices = @transform_1, window_bounds = array<i64: 8, 4>}, {pipeline_mode = #tpu.pipeline_mode<synchronous>, transform_indices = @transform_2, window_bounds = array<i64: 4, 128>}, {pipeline_mode = #tpu.pipeline_mode<synchronous>, transform_indices = @transform_3, window_bounds = array<i64: 4, 128>}, {pipeline_mode = #tpu.pipeline_mode<synchronous>, transform_indices = @transform_4, window_bounds = array<i64: 1, 128>}, {pipeline_mode = #tpu.pipeline_mode<synchronous>, transform_indices = @transform_5, window_bounds = array<i64: 128, 128>}, {pipeline_mode = #tpu.pipeline_mode<synchronous>, transform_indices = @transform_6, window_bounds = array<i64: 1, 128>}, {transform_indices = @transform_7, window_bounds = array<i64: 8, 128>}]} {
    %c0 = arith.constant 0 : index
    %c0_0 = arith.constant 0 : index
    %0 = vector.load %arg1[%c0, %c0_0] : memref<8x4xf32, #tpu.memory_space<vmem>>, vector<8x4xf32>
    %c0_1 = arith.constant 0 : index
    %c0_2 = arith.constant 0 : index
    %1 = vector.load %arg2[%c0_1, %c0_2] : memref<8x4xf32, #tpu.memory_space<vmem>>, vector<8x4xf32>
    %c0_3 = arith.constant 0 : index
    %c0_4 = arith.constant 0 : index
    %2 = vector.load %arg3[%c0_3, %c0_4] : memref<4x128xf32, #tpu.memory_space<vmem>>, vector<4x128xf32>
    %c0_5 = arith.constant 0 : index
    %c0_6 = arith.constant 0 : index
    %3 = vector.load %arg4[%c0_5, %c0_6] : memref<4x128xf32, #tpu.memory_space<vmem>>, vector<4x128xf32>
    %4 = vector.extract_strided_slice %0 {offsets = [0, 0], sizes = [8, 1], strides = [1, 1]} : vector<8x4xf32> to vector<8x1xf32>
    %5 = vector.extract_strided_slice %2 {offsets = [0, 0], sizes = [1, 128], strides = [1, 1]} : vector<4x128xf32> to vector<1x128xf32>
    %6 = vector.broadcast %4 : vector<8x1xf32> to vector<8x128xf32>
    %7 = vector.broadcast %5 : vector<1x128xf32> to vector<8x128xf32>
    %8 = arith.mulf %6, %7 : vector<8x128xf32>
    %c0_7 = arith.constant 0 : index
    %c0_8 = arith.constant 0 : index
    %9 = vector.load %arg5[%c0_7, %c0_8] : memref<1x128xf32, #tpu.memory_space<vmem>>, vector<1x128xf32>
    %10 = vector.broadcast %9 : vector<1x128xf32> to vector<8x128xf32>
    %11 = arith.addf %8, %10 : vector<8x128xf32>
    %12 = vector.extract_strided_slice %0 {offsets = [0, 1], sizes = [8, 1], strides = [1, 1]} : vector<8x4xf32> to vector<8x1xf32>
    %13 = vector.extract_strided_slice %2 {offsets = [1, 0], sizes = [1, 128], strides = [1, 1]} : vector<4x128xf32> to vector<1x128xf32>
    %14 = vector.broadcast %12 : vector<8x1xf32> to vector<8x128xf32>
    %15 = vector.broadcast %13 : vector<1x128xf32> to vector<8x128xf32>
    %16 = arith.mulf %14, %15 : vector<8x128xf32>
    %17 = arith.addf %11, %16 : vector<8x128xf32>
    %18 = vector.extract_strided_slice %0 {offsets = [0, 2], sizes = [8, 1], strides = [1, 1]} : vector<8x4xf32> to vector<8x1xf32>
    %19 = vector.extract_strided_slice %2 {offsets = [2, 0], sizes = [1, 128], strides = [1, 1]} : vector<4x128xf32> to vector<1x128xf32>
    %20 = vector.broadcast %18 : vector<8x1xf32> to vector<8x128xf32>
    %21 = vector.broadcast %19 : vector<1x128xf32> to vector<8x128xf32>
    %22 = arith.mulf %20, %21 : vector<8x128xf32>
    %23 = arith.addf %17, %22 : vector<8x128xf32>
    %24 = vector.extract_strided_slice %0 {offsets = [0, 3], sizes = [8, 1], strides = [1, 1]} : vector<8x4xf32> to vector<8x1xf32>
    %25 = vector.extract_strided_slice %2 {offsets = [3, 0], sizes = [1, 128], strides = [1, 1]} : vector<4x128xf32> to vector<1x128xf32>
    %26 = vector.broadcast %24 : vector<8x1xf32> to vector<8x128xf32>
    %27 = vector.broadcast %25 : vector<1x128xf32> to vector<8x128xf32>
    %28 = arith.mulf %26, %27 : vector<8x128xf32>
    %29 = arith.addf %23, %28 : vector<8x128xf32>
    %30 = vector.extract_strided_slice %1 {offsets = [0, 0], sizes = [8, 1], strides = [1, 1]} : vector<8x4xf32> to vector<8x1xf32>
    %31 = vector.extract_strided_slice %3 {offsets = [0, 0], sizes = [1, 128], strides = [1, 1]} : vector<4x128xf32> to vector<1x128xf32>
    %32 = vector.broadcast %30 : vector<8x1xf32> to vector<8x128xf32>
    %33 = vector.broadcast %31 : vector<1x128xf32> to vector<8x128xf32>
    %34 = arith.mulf %32, %33 : vector<8x128xf32>
    %35 = arith.addf %29, %34 : vector<8x128xf32>
    %36 = vector.extract_strided_slice %1 {offsets = [0, 1], sizes = [8, 1], strides = [1, 1]} : vector<8x4xf32> to vector<8x1xf32>
    %37 = vector.extract_strided_slice %3 {offsets = [1, 0], sizes = [1, 128], strides = [1, 1]} : vector<4x128xf32> to vector<1x128xf32>
    %38 = vector.broadcast %36 : vector<8x1xf32> to vector<8x128xf32>
    %39 = vector.broadcast %37 : vector<1x128xf32> to vector<8x128xf32>
    %40 = arith.mulf %38, %39 : vector<8x128xf32>
    %41 = arith.addf %35, %40 : vector<8x128xf32>
    %42 = vector.extract_strided_slice %1 {offsets = [0, 2], sizes = [8, 1], strides = [1, 1]} : vector<8x4xf32> to vector<8x1xf32>
    %43 = vector.extract_strided_slice %3 {offsets = [2, 0], sizes = [1, 128], strides = [1, 1]} : vector<4x128xf32> to vector<1x128xf32>
    %44 = vector.broadcast %42 : vector<8x1xf32> to vector<8x128xf32>
    %45 = vector.broadcast %43 : vector<1x128xf32> to vector<8x128xf32>
    %46 = arith.mulf %44, %45 : vector<8x128xf32>
    %47 = arith.addf %41, %46 : vector<8x128xf32>
    %48 = vector.extract_strided_slice %1 {offsets = [0, 3], sizes = [8, 1], strides = [1, 1]} : vector<8x4xf32> to vector<8x1xf32>
    %49 = vector.extract_strided_slice %3 {offsets = [3, 0], sizes = [1, 128], strides = [1, 1]} : vector<4x128xf32> to vector<1x128xf32>
    %50 = vector.broadcast %48 : vector<8x1xf32> to vector<8x128xf32>
    %51 = vector.broadcast %49 : vector<1x128xf32> to vector<8x128xf32>
    %52 = arith.mulf %50, %51 : vector<8x128xf32>
    %53 = arith.addf %47, %52 : vector<8x128xf32>
    %cst = arith.constant 0.000000e+00 : f32
    %54 = vector.broadcast %cst : f32 to vector<8x128xf32>
    %55 = arith.maximumf %53, %54 : vector<8x128xf32>
    %c0_9 = arith.constant 0 : index
    %c0_10 = arith.constant 0 : index
    %56 = vector.load %arg6[%c0_9, %c0_10] : memref<128x128xf32, #tpu.memory_space<vmem>>, vector<128x128xf32>
    %cst_11 = arith.constant dense<0.000000e+00> : vector<8x128xf32>
    %57 = tpu.matmul %55, %56, %cst_11 {dimension_numbers = #tpu.dot_dimension_numbers<[1], [0], [0], [1], [0, 0, 1, 1], [], []>} : vector<8x128xf32>, vector<128x128xf32>, vector<8x128xf32> -> vector<8x128xf32>
    %c0_12 = arith.constant 0 : index
    %c0_13 = arith.constant 0 : index
    %58 = vector.load %arg7[%c0_12, %c0_13] : memref<1x128xf32, #tpu.memory_space<vmem>>, vector<1x128xf32>
    %59 = vector.broadcast %58 : vector<1x128xf32> to vector<8x128xf32>
    %60 = arith.addf %57, %59 : vector<8x128xf32>
    %cst_14 = arith.constant 0.000000e+00 : f32
    %61 = vector.broadcast %cst_14 : f32 to vector<8x128xf32>
    %62 = arith.maximumf %60, %61 : vector<8x128xf32>
    %c0_15 = arith.constant 0 : index
    %c0_16 = arith.constant 0 : index
    %63 = vector.load %arg8[%c0_15, %c0_16] : memref<8x128xf32, #tpu.memory_space<vmem>>, vector<8x128xf32>
    tpu.vector_store %arg8[%c0_15, %c0_16], %62 {strides = array<i32>} : memref<8x128xf32, #tpu.memory_space<vmem>>, vector<8x128xf32>,
    return
  }
  func.func @transform_0(%arg0: i32) -> (i32, i32) {
    %c0_i32 = arith.constant 0 : i32
    %c0_i32_0 = arith.constant 0 : i32
    return %arg0, %c0_i32 : i32, i32
  }
  func.func @transform_1(%arg0: i32) -> (i32, i32) {
    %c0_i32 = arith.constant 0 : i32
    %c0_i32_0 = arith.constant 0 : i32
    return %arg0, %c0_i32 : i32, i32
  }
  func.func @transform_2(%arg0: i32) -> (i32, i32) {
    %c0_i32 = arith.constant 0 : i32
    %c0_i32_0 = arith.constant 0 : i32
    %c0_i32_1 = arith.constant 0 : i32
    return %c0_i32, %c0_i32_0 : i32, i32
  }
  func.func @transform_3(%arg0: i32) -> (i32, i32) {
    %c0_i32 = arith.constant 0 : i32
    %c0_i32_0 = arith.constant 0 : i32
    %c0_i32_1 = arith.constant 0 : i32
    return %c0_i32, %c0_i32_0 : i32, i32
  }
  func.func @transform_4(%arg0: i32) -> (i32, i32) {
    %c0_i32 = arith.constant 0 : i32
    %c0_i32_0 = arith.constant 0 : i32
    %c0_i32_1 = arith.constant 0 : i32
    return %c0_i32, %c0_i32_0 : i32, i32
  }
  func.func @transform_5(%arg0: i32) -> (i32, i32) {
    %c0_i32 = arith.constant 0 : i32
    %c0_i32_0 = arith.constant 0 : i32
    %c0_i32_1 = arith.constant 0 : i32
    return %c0_i32, %c0_i32_0 : i32, i32
  }
  func.func @transform_6(%arg0: i32) -> (i32, i32) {
    %c0_i32 = arith.constant 0 : i32
    %c0_i32_0 = arith.constant 0 : i32
    %c0_i32_1 = arith.constant 0 : i32
    return %c0_i32, %c0_i32_0 : i32, i32
  }
  func.func @transform_7(%arg0: i32) -> (i32, i32) {
    %c0_i32 = arith.constant 0 : i32
    %c0_i32_0 = arith.constant 0 : i32
    return %arg0, %c0_i32 : i32, i32
  }
}

</mosaic_0001>

<bundles_post_ra>
// kernel: tpu_custom_call.1
= control target key start
LH: loop header
LB: loop body
LE: loop exit
PB: predicated region body
PF: predicated region fallthrough
CT: control target
= control target key end

     0   :  { %12 = vsyncpa [#allocation3], 0  ;;  %s451_s0 = inlined_call_operand.vmem [shape: f32[8,4], index: 0, kind: input, shape index: {}]   ;;  %s452_s1 = inlined_call_operand.vmem [shape: f32[8,4], index: 1, kind: input, shape index: {}]   ;;  %s453_s2 = inlined_call_operand.vmem [shape: f32[4,128], index: 2, kind: input, shape index: {}]   ;;  %s454_s3 = inlined_call_operand.vmem [shape: f32[4,128], index: 3, kind: input, shape index: {}]   ;;  %s455_s4 = inlined_call_operand.vmem [shape: f32[1,128], index: 4, kind: input, shape index: {}]   ;;  %s456_s5 = inlined_call_operand.hbm [shape: f32[128,128], index: 5, kind: input, shape index: {}]   ;;  %s457_s6 = inlined_call_operand.vmem [shape: f32[1,128], index: 6, kind: input, shape index: {}]   ;;  %s458_s7 = inlined_call_operand.hbm [shape: f32[8,128], index: 7, kind: output, shape index: {}]  }
   0x1   :  { %13 = vsyncpa [#allocation4], 0  ;;  %s360_s24 = smov [#allocation2]  }
   0x2   :  { %s29_s25 = sshll.u32 %s360_s24, 4  ;;  %s30_s25 = int_to_ptr.vmem [resolvable:$true] %s29_s25 }
   0x3   :  { %s324_s26 = scalar_lea.vmem %s30_s25, 2048  ;;  %p329_p1 = scmp.lt.s32.totalorder %s30_s25, %s30_s25 }
   0x4   :  { %p325_p0 = scmp.ne.s32.totalorder %s30_s25, %s324_s26  ;;  %p330_p2 = scmp.lt.s32.totalorder %s324_s26, %s324_s26 }
   0x6   :  { %p331_p3 = por %p330_p2, %p329_p1 }
   0x8   :  { %p332_p4 = pnand %p331_p3, %p325_p0 }
   0xa   :  { %335 = shalt.err (!%p332_p4)
}
   0xb   :  { %s361_s27 = smov 128   ;;  %s362_s28 = smov 8  }
   0xc   :  { %35 = dma.hbm_to_vmem [thread:$0]  %s456_s5, 2048, %s30_s25, [#allocation3], %s361_s27, %s361_s27, %s362_s28  }
   0xd   :  { %356 = dma.done.wait [#allocation3], 2048  }
   0xe   :  { %357 = vsyncadd [#allocation3], 4294965248  ;;  %v363_v0 = vmov 2   ;;  %v364_v1 = vmov 0   ;;  %v365_v2 = vmov 0.0   ;;  %v41_v3 = vld [vmem:[%s451_s0] sm:$0xff]  ;;  %v50_v23 = vlaneseq }
   0xf   :  { %311 = vset.pattern.permute.xlu1 %v363_v0  ;;  %309 = vset.pattern.permute.xlu0 %v364_v1  ;;  %v150_v4 = vld [vmem:[#allocation2 + $0x78] sm:$0xff]  ;;  %v149_v5 = vld [vmem:[#allocation2 + $0x70] sm:$0xff]  ;;  %v366_v6 = vmov 3   ;;  %v367_v7 = vmov 1   ;;  %v148_v8 = vld [vmem:[#allocation2 + $0x68] sm:$0xff]  ;;  %vm368_vm0 = vmmov 0  }
  0x10   :  { %264 = vmatprep.subr.mxu0 %v365_v2  ;;  %74 = vperm.xlu1 %311, %v41_v3   ;;  %v42_v9 = vld [vmem:[%s452_s1] sm:$0xff]  ;;  %v146_v11 = vld [vmem:[#allocation2 + $0x58] sm:$0xff]  ;;  %v145_v12 = vld [vmem:[#allocation2 + $0x50] sm:$0xff]  ;;  %v51_v24 = vshrl.u32 %v50_v23, 7 }
  0x11   :  { %47 = vperm.xlu0 %309, %v41_v3   ;;  %265 = vmatpush3.msra.mxu0 %v150_v4  ;;  %v147_v10 = vld [vmem:[#allocation2 + $0x60] sm:$0xff]  ;;  %v144_v13 = vld [vmem:[#allocation2 + $0x48] sm:$0xff]  ;;  %v142_v15 = vld [vmem:[#allocation2 + $0x38] sm:$0xff] }
  0x12   :  { %266 = vmatprep.subr.mxu0 %v365_v2  ;;  %v143_v14 = vld [vmem:[#allocation2 + $0x40] sm:$0xff]  ;;  %296 = vmatprep.mubr.msk.f32.mxu0 %vm368_vm0, %v365_v2  ;;  %v141_v16 = vld [vmem:[#allocation2 + $0x30] sm:$0xff]  ;;  %v140_v17 = vld [vmem:[#allocation2 + $0x28] sm:$0xff]  ;;  %v52_v25 = vsub.s32 0, %v51_v24  ;;  %v69_v28 = vsub.s32 1, %v51_v24  ;;  %v79_v29 = vsub.s32 2, %v51_v24 }
  0x13   :  { %267 = vmatpush3.msra.mxu0 %v149_v5  ;;  %v139_v18 = vld [vmem:[#allocation2 + $0x20] sm:$0xff]  ;;  %v138_v19 = vld [vmem:[#allocation2 + $0x18] sm:$0xff]  ;;  %v137_v20 = vld [vmem:[#allocation2 + $0x10] sm:$0xff]  ;;  %v89_v33 = vsub.s32 3, %v51_v24 }
  0x14   :  { %312 = vset.pattern.permute.xlu1 %v366_v6  ;;  %268 = vmatprep.subr.mxu0 %v365_v2  ;;  %v136_v21 = vld [vmem:[#allocation2 + $0x8] sm:$0xff]  ;;  %v135_v22 = vld [vmem:[#allocation2] sm:$0xff] }
  0x15   :  { %310 = vset.pattern.permute.xlu0 %v367_v7  ;;  %84 = vperm.xlu1 %312, %v41_v3   ;;  %v43_v26 = vld [vmem:[%s453_s2] sm:$0xf] }
  0x16   :  { %64 = vperm.xlu0 %310, %v41_v3   ;;  %269 = vmatpush3.msra.mxu0 %v148_v8  ;;  %v53_v27 = vrot.slane %v43_v26, %v52_v25  ;;  %v70_v34 = vrot.slane %v43_v26, %v69_v28  ;;  %v245_v35 = vld [vmem:[%s455_s4] ss:$0 sm:$0xff]  ;;  %v80_v36 = vrot.slane %v43_v26, %v79_v29  ;;  %s369_s4 = smov [#allocation5]  }
  0x17   :  { %270 = vmatprep.subr.mxu0 %v365_v2  ;;  %v44_v37 = vld [vmem:[%s454_s3] sm:$0xf]  ;;  %v90_v41 = vrot.slane %v43_v26, %v89_v33  ;;  %s236_s15 = sshll.u32 %s369_s4, 4  ;;  %s237_s15 = int_to_ptr.vmem [resolvable:$true] %s236_s15 }
  0x18   :  { %271 = vmatpush3.msra.mxu0 %v147_v10  ;;  %v101_v43 = vrot.slane %v44_v37, %v52_v25  ;;  %v111_v48 = vrot.slane %v44_v37, %v69_v28  ;;  %v121_v53 = vrot.slane %v44_v37, %v79_v29  ;;  %v131_v54 = vrot.slane %v44_v37, %v89_v33  ;;  %s336_s16 = scalar_lea.vmem %s237_s15, 128  ;;  %p341_p6 = scmp.lt.s32.totalorder %s237_s15, %s237_s15 }
  0x19   :  { %313 = vset.pattern.permute.xlu1 %v364_v1  ;;  %272 = vmatprep.subr.mxu0 %v365_v2  ;;  %v246_v1 = vld [vmem:[%s457_s6] ss:$0 sm:$0xff]  ;;  %p337_p5 = scmp.ne.s32.totalorder %s237_s15, %s336_s16  ;;  %p342_p7 = scmp.lt.s32.totalorder %s336_s16, %s336_s16 }
  0x1a   :  { %105 = vperm.xlu0 %310, %v42_v9   ;;  %95 = vperm.xlu1 %313, %v42_v9  }
  0x1b   :  { %273 = vmatpush3.msra.mxu0 %v146_v11  ;;  %p343_p8 = por %p342_p7, %p341_p6 }
  0x1c   :  { %274 = vmatprep.subr.mxu0 %v365_v2 }
  0x1d   :  { %275 = vmatpush3.msra.mxu0 %v145_v12  ;;  %p344_p9 = pnand %p343_p8, %p337_p5 }
  0x1e   :  { %315 = vset.pattern.permute.xlu0 %v366_v6  ;;  %314 = vset.pattern.permute.xlu1 %v363_v0 }
  0x1f   :  { %125 = vperm.xlu0 %315, %v42_v9   ;;  %115 = vperm.xlu1 %314, %v42_v9  }
  0x20   :  { %276 = vmatprep.subr.mxu0 %v365_v2 }
  0x21   :  { %277 = vmatpush3.msra.mxu0 %v144_v13 }
  0x22   :  { %278 = vmatprep.subr.mxu0 %v365_v2 }
  0x23   :  { %279 = vmatpush3.msra.mxu0 %v143_v14 }
  0x24   :  { %280 = vmatprep.subr.mxu0 %v365_v2 }
  0x25   :  { %281 = vmatpush3.msra.mxu0 %v142_v15 }
  0x26   :  { %282 = vmatprep.subr.mxu0 %v365_v2 }
  0x27   :  { %283 = vmatpush3.msra.mxu0 %v141_v16 }
  0x28   :  { %284 = vmatprep.subr.mxu0 %v365_v2 }
  0x29   :  { %285 = vmatpush3.msra.mxu0 %v140_v17 }
  0x2a   :  { %286 = vmatprep.subr.mxu0 %v365_v2 }
  0x2b   :  { %287 = vmatpush3.msra.mxu0 %v139_v18 }
  0x2c   :  { %288 = vmatprep.subr.mxu0 %v365_v2 }
  0x2d   :  { %289 = vmatpush3.msra.mxu0 %v138_v19 }
  0x2e   :  { %290 = vmatprep.subr.mxu0 %v365_v2 }
  0x2f   :  { %291 = vmatpush3.msra.mxu0 %v137_v20 }
  0x30   :  { %292 = vmatprep.subr.mxu0 %v365_v2 }
  0x31   :  { %293 = vmatpush3.msra.mxu0 %v136_v21 }
  0x32   :  { %294 = vmatprep.subr.mxu0 %v365_v2 }
  0x33   :  { %295 = vmatpush3.msra.mxu0 %v135_v22 }
  0x8b   :  { %v75_v30 = vpop.permute.xlu1 %74 }
  0x8c   :  { %v48_v31 = vpop.permute.xlu0 %47  ;;  %v81_v44 = vmul.f32 %v80_v36, %v75_v30 }
  0x8d   :  { %v54_v32 = vmul.f32 %v53_v27, %v48_v31 }
  0x8f   :  { %v62_v40 = vadd.f32 %v245_v35, %v54_v32 }
  0x90   :  { %v85_v38 = vpop.permute.xlu1 %84 }
  0x91   :  { %v65_v39 = vpop.permute.xlu0 %64  ;;  %v91_v46 = vmul.f32 %v90_v41, %v85_v38 }
  0x92   :  { %v71_v42 = vmul.f32 %v70_v34, %v65_v39 }
  0x94   :  { %v72_v45 = vadd.f32 %v71_v42, %v62_v40 }
  0x95   :  { %v106_v49 = vpop.permute.xlu0 %105  ;;  %v96_v50 = vpop.permute.xlu1 %95 }
  0x96   :  { %v82_v47 = vadd.f32 %v81_v44, %v72_v45  ;;  %v102_v51 = vmul.f32 %v101_v43, %v96_v50  ;;  %v112_v55 = vmul.f32 %v111_v48, %v106_v49 }
  0x98   :  { %v92_v52 = vadd.f32 %v91_v46, %v82_v47 }
  0x9a   :  { %v103_v56 = vadd.f32 %v102_v51, %v92_v52  ;;  %v126_v57 = vpop.permute.xlu0 %125  ;;  %v116_v58 = vpop.permute.xlu1 %115 }
  0x9b   :  { %v122_v60 = vmul.f32 %v121_v53, %v116_v58  ;;  %v132_v61 = vmul.f32 %v131_v54, %v126_v57 }
  0x9c   :  { %v113_v59 = vadd.f32 %v112_v55, %v103_v56 }
  0x9e   :  { %v123_v62 = vadd.f32 %v122_v60, %v113_v59 }
  0xa0   :  { %v133_v63 = vadd.f32 %v132_v61, %v123_v62 }
  0xa2   :  { %v134_v0 = vmax.f32 %v133_v63, 0.0 }
  0xa4   :  { %297 = vmatmul.mubr.f32.vlgmr.msra.gmra.mxu0 %v134_v0 }
 0x164   :  { %v224_v2 = vpop.f32.mrf.mxu0 }
 0x165   :  { %v225_v3 = vadd.f32 %v246_v1, %v224_v2 }
 0x166   :  { %v298_v4 = vpop.f32.mrf.mxu0 }
 0x167   :  { %v228_v5 = vmax.f32 %v225_v3, 0.0 }
 0x169   :  { %229 = vst [vmem:[#allocation5] sm:$0xff] %v228_v5 }
 0x16a   :  { %347 = shalt.err (!%p344_p9)
}
 0x16b   :  { %239 = dma.vmem_to_hbm [thread:$0]  %s237_s15, 128, %s458_s7, [#allocation4]  }
 0x16c   :  { %358 = dma.done.wait [#allocation4], 128  }
 0x16d   :  { %359 = vsyncadd [#allocation4], 4294967168 }
 0x16e   :  { %243 = vsyncpa [#allocation3], 1 }
 0x16f   :  { %244 = vsyncpa [#allocation4], 1 }

</bundles_post_ra>
